<compile_context>
chip_gen: v7x
topology: tpu7x:2x2x1
jax: 0.10.0
libtpu: 0.0.40
codegen_flags: <defaults>
</compile_context>

<pallas_src>
import jax
import jax.numpy as jnp
from jax.experimental import pallas as pl
from jax.experimental.pallas import tpu as pltpu

HEAD_W = 128  # lane-dense fused head width: Q lanes [0, A), padding lanes zero


def _round_up(n, m):
    return ((n + m - 1) // m) * m


def _dueling_kernel(x_ref,
                    w1_ref, b1_ref,
                    w2_ref, b2_ref,
                    wbr_ref, bbr_ref,
                    wq_ref, bq_ref,
                    out_ref):
    f32 = jnp.float32
    bf16 = jnp.bfloat16

    # f1 + ReLU: (TB, state_dim) @ (state_dim, 512), bf16 x bf16 -> f32 acc.
    h1 = jnp.dot(x_ref[...].astype(bf16), w1_ref[...],
                 preferred_element_type=f32) + b1_ref[...]
    h1 = jnp.maximum(h1, 0.0)

    # f2 + ReLU: (TB, 512) @ (512, 256)
    h2 = jnp.dot(h1.astype(bf16), w2_ref[...],
                 preferred_element_type=f32) + b2_ref[...]
    h2 = jnp.maximum(h2, 0.0)

    # Fused val/adv hidden branch + ReLU: lanes [0,128)=val_hidden, [128,256)=adv_hidden
    br = jnp.dot(h2.astype(bf16), wbr_ref[...],
                 preferred_element_type=f32) + bbr_ref[...]
    br = jnp.maximum(br, 0.0)

    # Fused dueling head: the correction (val - mean(adv)) is folded into wq/bq at
    # pack time, so Q comes straight out of this GEMM.  Padding lanes [A,128) have
    # zero weight columns / zero bias, so they stay exactly zero.
    q = jnp.dot(br.astype(bf16), wq_ref[...],
                preferred_element_type=f32) + bq_ref[...]
    out_ref[...] = q.astype(out_ref.dtype)


def init_params(key, state_dim, action_dim):
    """nn.Linear-style init (uniform +-1/sqrt(fan_in)).
    Weights stored as (in, out) [transposed vs. PyTorch], biases as (1, out)."""
    def linear(key, fan_in, fan_out):
        kw, kb = jax.random.split(key)
        bound = 1.0 / jnp.sqrt(fan_in)
        w = jax.random.uniform(kw, (fan_in, fan_out), jnp.float32, -bound, bound)
        b = jax.random.uniform(kb, (1, fan_out), jnp.float32, -bound, bound)
        return w, b

    keys = jax.random.split(key, 6)
    w1, b1 = linear(keys[0], state_dim, 512)
    w2, b2 = linear(keys[1], 512, 256)
    wvh, bvh = linear(keys[2], 256, 128)
    wah, bah = linear(keys[3], 256, 128)
    wv, bv = linear(keys[4], 128, 1)
    wa, ba = linear(keys[5], 128, action_dim)
    return dict(w1=w1, b1=b1, w2=w2, b2=b2, wvh=wvh, bvh=bvh,
                wah=wah, bah=bah, wv=wv, bv=bv, wa=wa, ba=ba)


def pack_params(raw, action_dim):
    """Fuse the branch-hidden layers into one GEMM and fold the dueling
    aggregation into one lane-dense head GEMM.  Weights bf16 (halves HBM DMA,
    bf16-native MXU); the fold is computed in f32; biases stay f32."""
    assert action_dim + 1 <= HEAD_W  # TODO(synk): tile the fused head if action_dim >= 128
    bf16 = jnp.bfloat16
    f32 = jnp.float32

    # Branch hidden: lanes [0,128) = val_hidden, [128,256) = adv_hidden.
    w_branch = jnp.concatenate([raw["wvh"], raw["wah"]], axis=1)   # (256, 256)
    b_branch = jnp.concatenate([raw["bvh"], raw["bah"]], axis=1)   # (1, 256)

    # Block-diagonal fused head (pre-fold): rows [0,128) feed the val lane,
    # rows [128,256) the adv lanes.  hd[:, j<A] = adv_j, hd[:, A] = val.
    w_hd = jnp.zeros((256, HEAD_W), f32)
    w_hd = w_hd.at[128:, :action_dim].set(raw["wa"])
    w_hd = w_hd.at[:128, action_dim].set(raw["wv"][:, 0])
    b_hd = jnp.zeros((1, HEAD_W), f32)
    b_hd = b_hd.at[0, :action_dim].set(raw["ba"][0])
    b_hd = b_hd.at[0, action_dim].set(raw["bv"][0, 0])

    # Fold Q = adv + val - mean(adv) into the head weights (done in f32):
    #   corr = +1 on the val lane, -1/A on the adv lanes, 0 elsewhere
    #   W_q[:, j<A] = W_hd[:, j] + W_hd @ corr ;  b_q likewise ;  padding lanes = 0.
    corr = jnp.zeros((HEAD_W,), f32)
    corr = corr.at[:action_dim].set(-1.0 / action_dim)
    corr = corr.at[action_dim].set(1.0)
    w_corr = w_hd @ corr                    # (256,)
    b_corr = b_hd @ corr                    # (1,)
    lane_mask = (jnp.arange(HEAD_W) < action_dim).astype(f32)      # zero padding lanes
    w_q = (w_hd + w_corr[:, None]) * lane_mask[None, :]
    b_q = (b_hd + b_corr[:, None]) * lane_mask[None, :]

    return dict(
        w1=raw["w1"].astype(bf16), b1=raw["b1"],
        w2=raw["w2"].astype(bf16), b2=raw["b2"],
        wbr=w_branch.astype(bf16), bbr=b_branch,
        wq=w_q.astype(bf16), bq=b_q,
    )


def dueling_dqn_forward(x, packed, action_dim, *, tb=1024, lane_dense_out=False):
    """x: (B, state_dim) float32. packed: output of pack_params.
    Returns (B, action_dim) f32, or the lane-dense (B, 128) slab if
    lane_dense_out=True (lanes [0,A) = Q, rest zero) to avoid the extra
    HBM pass of the lane-slice when the consumer can read it directly."""
    B, state_dim = x.shape
    B8 = _round_up(B, 8)
    TB = min(tb, B8)
    # v7x megacore: if a single tile would cover a large batch, split it so the
    # "parallel" batch axis has >=2 grid steps to shard across both TensorCores.
    if TB == B8 and B8 >= 1024:
        TB = _round_up(pl.cdiv(B8, 2), 8)
    B_pad = _round_up(B, TB)
    if B_pad != B:
        x = jnp.pad(x, ((0, B_pad - B), (0, 0)))

    args = (x,
            packed["w1"], packed["b1"],
            packed["w2"], packed["b2"],
            packed["wbr"], packed["bbr"],
            packed["wq"], packed["bq"])

    def const_map(i):          # weights/biases: same block every grid step -> VMEM-resident
        return (0, 0)

    in_specs = [pl.BlockSpec((TB, state_dim), lambda i: (i, 0))]
    in_specs += [pl.BlockSpec(a.shape, const_map) for a in args[1:]]
    out_spec = pl.BlockSpec((TB, HEAD_W), lambda i: (i, 0))

    flops = 2 * B_pad * (state_dim * 512 + 512 * 256 + 256 * 256 + 256 * HEAD_W)
    bytes_accessed = (sum(int(a.size) * a.dtype.itemsize for a in args)
                      + B_pad * HEAD_W * 4)

    q_padded = pl.pallas_call(
        _dueling_kernel,
        out_shape=jax.ShapeDtypeStruct((B_pad, HEAD_W), jnp.float32),
        grid_spec=pltpu.PrefetchScalarGridSpec(
            num_scalar_prefetch=0,
            grid=(B_pad // TB,),
            in_specs=in_specs,
            out_specs=out_spec,
        ),
        compiler_params=pltpu.CompilerParams(
            dimension_semantics=("parallel",),
            # Only raise the scoped-VMEM limit for oversized tiles (v5e default is 16 MiB).
            vmem_limit_bytes=(32 << 20) if TB > 1024 else None),
        cost_estimate=pl.CostEstimate(
            flops=flops, transcendentals=0, bytes_accessed=bytes_accessed),
    )(*args)

    if lane_dense_out:
        return q_padded[:B]
    return q_padded[:B, :action_dim]


def reference_forward(x, raw):
    """Pure-JAX reference matching the PyTorch forward, with the same bf16
    weight/activation rounding the kernel uses (dueling head left unfused)."""
    bf16, f32 = jnp.bfloat16, jnp.float32

    def mm(a, w):
        return jnp.dot(a.astype(bf16), w.astype(bf16), preferred_element_type=f32)

    h1 = jnp.maximum(mm(x, raw["w1"]) + raw["b1"], 0.0)
    h2 = jnp.maximum(mm(h1, raw["w2"]) + raw["b2"], 0.0)
    vh = jnp.maximum(mm(h2, raw["wvh"]) + raw["bvh"], 0.0)
    ah = jnp.maximum(mm(h2, raw["wah"]) + raw["bah"], 0.0)
    val = mm(vh, raw["wv"]) + raw["bv"]
    adv = mm(ah, raw["wa"]) + raw["ba"]
    return adv + val - jnp.mean(adv, axis=1, keepdims=True)


if __name__ == "__main__":
    state_dim = 16
    action_dim = 4
    batch = 8

    key = jax.random.PRNGKey(0)
    k_params, k_x = jax.random.split(key)
    raw = init_params(k_params, state_dim, action_dim)
    packed = pack_params(raw, action_dim)
    x = jax.random.normal(k_x, (batch, state_dim), jnp.float32)

    q = dueling_dqn_forward(x, packed, action_dim)
    q = jax.block_until_ready(q)

    q_ref = reference_forward(x, raw)
    assert q.shape == (batch, action_dim)
    # Tolerance covers the single extra bf16 rounding of the folded head weights
    # and the re-associated mean-correction; structural bugs would be O(1) off.
    assert jnp.allclose(q, q_ref, atol=2e-2, rtol=2e-2), "mismatch vs reference"

    print("KERNEL_OK")
</pallas_src>

<mosaic_0001>
module attributes {stable_mosaic.version = 11 : i64} {
  func.func @_dueling_kernel(%arg0: i32, %arg1: memref<8x16xf32, #tpu.memory_space<vmem>>, %arg2: memref<16x512xbf16, #tpu.memory_space<vmem>>, %arg3: memref<1x512xf32, #tpu.memory_space<vmem>>, %arg4: memref<512x256xbf16, #tpu.memory_space<vmem>>, %arg5: memref<1x256xf32, #tpu.memory_space<vmem>>, %arg6: memref<256x256xbf16, #tpu.memory_space<vmem>>, %arg7: memref<1x256xf32, #tpu.memory_space<vmem>>, %arg8: memref<256x128xbf16, #tpu.memory_space<vmem>>, %arg9: memref<1x128xf32, #tpu.memory_space<vmem>>, %arg10: memref<8x128xf32, #tpu.memory_space<vmem>>) attributes {dimension_semantics = [#tpu.dimension_semantics<parallel>], iteration_bounds = array<i64: 1>, scalar_prefetch = 0 : i64, scratch_operands = 0 : i64, tpu.core_type = #tpu.core_type<tc>, window_params = [{transform_indices = @transform_0, window_bounds = array<i64: 8, 16>}, {pipeline_mode = #tpu.pipeline_mode<synchronous>, transform_indices = @transform_1, window_bounds = array<i64: 16, 512>}, {pipeline_mode = #tpu.pipeline_mode<synchronous>, transform_indices = @transform_2, window_bounds = array<i64: 1, 512>}, {pipeline_mode = #tpu.pipeline_mode<synchronous>, transform_indices = @transform_3, window_bounds = array<i64: 512, 256>}, {pipeline_mode = #tpu.pipeline_mode<synchronous>, transform_indices = @transform_4, window_bounds = array<i64: 1, 256>}, {pipeline_mode = #tpu.pipeline_mode<synchronous>, transform_indices = @transform_5, window_bounds = array<i64: 256, 256>}, {pipeline_mode = #tpu.pipeline_mode<synchronous>, transform_indices = @transform_6, window_bounds = array<i64: 1, 256>}, {pipeline_mode = #tpu.pipeline_mode<synchronous>, transform_indices = @transform_7, window_bounds = array<i64: 256, 128>}, {pipeline_mode = #tpu.pipeline_mode<synchronous>, transform_indices = @transform_8, window_bounds = array<i64: 1, 128>}, {transform_indices = @transform_9, window_bounds = array<i64: 8, 128>}]} {
    %c0 = arith.constant 0 : index
    %c0_0 = arith.constant 0 : index
    %0 = vector.load %arg1[%c0, %c0_0] : memref<8x16xf32, #tpu.memory_space<vmem>>, vector<8x16xf32>
    %1 = arith.truncf %0 : vector<8x16xf32> to vector<8x16xbf16>
    %c0_1 = arith.constant 0 : index
    %c0_2 = arith.constant 0 : index
    %2 = vector.load %arg2[%c0_1, %c0_2] : memref<16x512xbf16, #tpu.memory_space<vmem>>, vector<16x512xbf16>
    %cst = arith.constant dense<0.000000e+00> : vector<8x512xf32>
    %3 = tpu.matmul %1, %2, %cst {dimension_numbers = #tpu.dot_dimension_numbers<[1], [0], [0], [1], [0, 0, 1, 1], [], []>} : vector<8x16xbf16>, vector<16x512xbf16>, vector<8x512xf32> -> vector<8x512xf32>
    %c0_3 = arith.constant 0 : index
    %c0_4 = arith.constant 0 : index
    %4 = vector.load %arg3[%c0_3, %c0_4] : memref<1x512xf32, #tpu.memory_space<vmem>>, vector<1x512xf32>
    %5 = vector.broadcast %4 : vector<1x512xf32> to vector<8x512xf32>
    %6 = arith.addf %3, %5 : vector<8x512xf32>
    %cst_5 = arith.constant 0.000000e+00 : f32
    %7 = vector.broadcast %cst_5 : f32 to vector<8x512xf32>
    %8 = arith.maximumf %6, %7 : vector<8x512xf32>
    %9 = arith.truncf %8 : vector<8x512xf32> to vector<8x512xbf16>
    %c0_6 = arith.constant 0 : index
    %c0_7 = arith.constant 0 : index
    %10 = vector.load %arg4[%c0_6, %c0_7] : memref<512x256xbf16, #tpu.memory_space<vmem>>, vector<512x256xbf16>
    %cst_8 = arith.constant dense<0.000000e+00> : vector<8x256xf32>
    %11 = tpu.matmul %9, %10, %cst_8 {dimension_numbers = #tpu.dot_dimension_numbers<[1], [0], [0], [1], [0, 0, 1, 1], [], []>} : vector<8x512xbf16>, vector<512x256xbf16>, vector<8x256xf32> -> vector<8x256xf32>
    %c0_9 = arith.constant 0 : index
    %c0_10 = arith.constant 0 : index
    %12 = vector.load %arg5[%c0_9, %c0_10] : memref<1x256xf32, #tpu.memory_space<vmem>>, vector<1x256xf32>
    %13 = vector.broadcast %12 : vector<1x256xf32> to vector<8x256xf32>
    %14 = arith.addf %11, %13 : vector<8x256xf32>
    %cst_11 = arith.constant 0.000000e+00 : f32
    %15 = vector.broadcast %cst_11 : f32 to vector<8x256xf32>
    %16 = arith.maximumf %14, %15 : vector<8x256xf32>
    %17 = arith.truncf %16 : vector<8x256xf32> to vector<8x256xbf16>
    %c0_12 = arith.constant 0 : index
    %c0_13 = arith.constant 0 : index
    %18 = vector.load %arg6[%c0_12, %c0_13] : memref<256x256xbf16, #tpu.memory_space<vmem>>, vector<256x256xbf16>
    %cst_14 = arith.constant dense<0.000000e+00> : vector<8x256xf32>
    %19 = tpu.matmul %17, %18, %cst_14 {dimension_numbers = #tpu.dot_dimension_numbers<[1], [0], [0], [1], [0, 0, 1, 1], [], []>} : vector<8x256xbf16>, vector<256x256xbf16>, vector<8x256xf32> -> vector<8x256xf32>
    %c0_15 = arith.constant 0 : index
    %c0_16 = arith.constant 0 : index
    %20 = vector.load %arg7[%c0_15, %c0_16] : memref<1x256xf32, #tpu.memory_space<vmem>>, vector<1x256xf32>
    %21 = vector.broadcast %20 : vector<1x256xf32> to vector<8x256xf32>
    %22 = arith.addf %19, %21 : vector<8x256xf32>
    %cst_17 = arith.constant 0.000000e+00 : f32
    %23 = vector.broadcast %cst_17 : f32 to vector<8x256xf32>
    %24 = arith.maximumf %22, %23 : vector<8x256xf32>
    %25 = arith.truncf %24 : vector<8x256xf32> to vector<8x256xbf16>
    %c0_18 = arith.constant 0 : index
    %c0_19 = arith.constant 0 : index
    %26 = vector.load %arg8[%c0_18, %c0_19] : memref<256x128xbf16, #tpu.memory_space<vmem>>, vector<256x128xbf16>
    %cst_20 = arith.constant dense<0.000000e+00> : vector<8x128xf32>
    %27 = tpu.matmul %25, %26, %cst_20 {dimension_numbers = #tpu.dot_dimension_numbers<[1], [0], [0], [1], [0, 0, 1, 1], [], []>} : vector<8x256xbf16>, vector<256x128xbf16>, vector<8x128xf32> -> vector<8x128xf32>
    %c0_21 = arith.constant 0 : index
    %c0_22 = arith.constant 0 : index
    %28 = vector.load %arg9[%c0_21, %c0_22] : memref<1x128xf32, #tpu.memory_space<vmem>>, vector<1x128xf32>
    %29 = vector.broadcast %28 : vector<1x128xf32> to vector<8x128xf32>
    %30 = arith.addf %27, %29 : vector<8x128xf32>
    %c0_23 = arith.constant 0 : index
    %c0_24 = arith.constant 0 : index
    %31 = vector.load %arg10[%c0_23, %c0_24] : memref<8x128xf32, #tpu.memory_space<vmem>>, vector<8x128xf32>
    tpu.vector_store %arg10[%c0_23, %c0_24], %30 {strides = array<i32>} : memref<8x128xf32, #tpu.memory_space<vmem>>, vector<8x128xf32>,
    return
  }
  func.func @transform_0(%arg0: i32) -> (i32, i32) {
    %c0_i32 = arith.constant 0 : i32
    %c0_i32_0 = arith.constant 0 : i32
    return %arg0, %c0_i32 : i32, i32
  }
  func.func @transform_1(%arg0: i32) -> (i32, i32) {
    %c0_i32 = arith.constant 0 : i32
    %c0_i32_0 = arith.constant 0 : i32
    %c0_i32_1 = arith.constant 0 : i32
    return %c0_i32, %c0_i32_0 : i32, i32
  }
  func.func @transform_2(%arg0: i32) -> (i32, i32) {
    %c0_i32 = arith.constant 0 : i32
    %c0_i32_0 = arith.constant 0 : i32
    %c0_i32_1 = arith.constant 0 : i32
    return %c0_i32, %c0_i32_0 : i32, i32
  }
  func.func @transform_3(%arg0: i32) -> (i32, i32) {
    %c0_i32 = arith.constant 0 : i32
    %c0_i32_0 = arith.constant 0 : i32
    %c0_i32_1 = arith.constant 0 : i32
    return %c0_i32, %c0_i32_0 : i32, i32
  }
  func.func @transform_4(%arg0: i32) -> (i32, i32) {
    %c0_i32 = arith.constant 0 : i32
    %c0_i32_0 = arith.constant 0 : i32
    %c0_i32_1 = arith.constant 0 : i32
    return %c0_i32, %c0_i32_0 : i32, i32
  }
  func.func @transform_5(%arg0: i32) -> (i32, i32) {
    %c0_i32 = arith.constant 0 : i32
    %c0_i32_0 = arith.constant 0 : i32
    %c0_i32_1 = arith.constant 0 : i32
    return %c0_i32, %c0_i32_0 : i32, i32
  }
  func.func @transform_6(%arg0: i32) -> (i32, i32) {
    %c0_i32 = arith.constant 0 : i32
    %c0_i32_0 = arith.constant 0 : i32
    %c0_i32_1 = arith.constant 0 : i32
    return %c0_i32, %c0_i32_0 : i32, i32
  }
  func.func @transform_7(%arg0: i32) -> (i32, i32) {
    %c0_i32 = arith.constant 0 : i32
    %c0_i32_0 = arith.constant 0 : i32
    %c0_i32_1 = arith.constant 0 : i32
    return %c0_i32, %c0_i32_0 : i32, i32
  }
  func.func @transform_8(%arg0: i32) -> (i32, i32) {
    %c0_i32 = arith.constant 0 : i32
    %c0_i32_0 = arith.constant 0 : i32
    %c0_i32_1 = arith.constant 0 : i32
    return %c0_i32, %c0_i32_0 : i32, i32
  }
  func.func @transform_9(%arg0: i32) -> (i32, i32) {
    %c0_i32 = arith.constant 0 : i32
    %c0_i32_0 = arith.constant 0 : i32
    return %arg0, %c0_i32 : i32, i32
  }
}

</mosaic_0001>

<bundles_post_ra>
// kernel: tpu_custom_call.1
= control target key start
LH: loop header
LB: loop body
LE: loop exit
PB: predicated region body
PF: predicated region fallthrough
CT: control target
= control target key end

     0   :  { %14 = vsyncpa [#allocation3], 0  ;;  %s1812_s0 = inlined_call_operand.hbm [shape: f32[8,16], index: 0, kind: input, shape index: {}]   ;;  %s1813_s1 = inlined_call_operand.hbm [shape: bf16[16,512], index: 1, kind: input, shape index: {}]   ;;  %s1814_s2 = inlined_call_operand.vmem [shape: f32[1,512], index: 2, kind: input, shape index: {}]   ;;  %s1815_s3 = inlined_call_operand.hbm [shape: bf16[512,256], index: 3, kind: input, shape index: {}]   ;;  %s1816_s4 = inlined_call_operand.vmem [shape: f32[1,256], index: 4, kind: input, shape index: {}]   ;;  %s1817_s5 = inlined_call_operand.hbm [shape: bf16[256,256], index: 5, kind: input, shape index: {}]   ;;  %s1818_s6 = inlined_call_operand.vmem [shape: f32[1,256], index: 6, kind: input, shape index: {}]   ;;  %s1819_s7 = inlined_call_operand.hbm [shape: bf16[256,128], index: 7, kind: input, shape index: {}]   ;;  %s1820_s8 = inlined_call_operand.vmem [shape: f32[1,128], index: 8, kind: input, shape index: {}]   ;;  %s1821_s9 = inlined_call_operand.hbm [shape: f32[8,128], index: 9, kind: output, shape index: {}]  }
   0x1   :  { %15 = vsyncpa [#allocation6], 0 }
   0x2   :  { %16 = vsyncpa [#allocation9], 0 }
   0x3   :  { %17 = vsyncpa [#allocation4], 0  ;;  %s1632_s30 = smov [#allocation5]   ;;  %s1492_s13 = scalar_lea.hbm %s1813_s1, 512 }
   0x4   :  { %s33_s10 = sshll.u32 %s1632_s30, 4  ;;  %p1493_p0 = scmp.ne.s32.totalorder %s1813_s1, %s1492_s13  ;;  %s34_s10 = int_to_ptr.vmem [resolvable:$true] %s33_s10 }
   0x5   :  { %p1496_p1 = scmp.lt.u32.totalorder %s1492_s13, %s1813_s1 }
   0x7   :  { %p1498_p2 = pnand %p1496_p1, %p1493_p0 }
   0x9   :  { %1501 = shalt.err (!%p1498_p2)
}
   0xa   :  { %s1502_s18 = scalar_lea.vmem %s34_s10, 512  ;;  %p1507_p4 = scmp.lt.s32.totalorder %s34_s10, %s34_s10 }
   0xb   :  { %p1503_p3 = scmp.ne.s32.totalorder %s34_s10, %s1502_s18  ;;  %p1508_p5 = scmp.lt.s32.totalorder %s1502_s18, %s1502_s18 }
   0xd   :  { %p1509_p6 = por %p1508_p5, %p1507_p4 }
   0xf   :  { %p1510_p7 = pnand %p1509_p6, %p1503_p3 }
  0x11   :  { %1513 = shalt.err (!%p1510_p7)
}
  0x12   :  { %s1633_s19 = smov 256   ;;  %s1634_s20 = smov 16  }
  0x13   :  { %39 = dma.hbm_to_vmem [thread:$0]  %s1813_s1, 512, %s34_s10, [#allocation6], %s1633_s19, %s1633_s19, %s1634_s20  }
  0x14   :  { %s1635_s23 = smov [#allocation8]   ;;  %s1636_s25 = smov [#allocation2]  }
  0x15   :  { %s61_s24 = sshll.u32 %s1635_s23, 4  ;;  %s24_s26 = sshll.u32 %s1636_s25, 4  ;;  %s62_s24 = int_to_ptr.vmem [resolvable:$true] %s61_s24  ;;  %s25_s26 = int_to_ptr.vmem [resolvable:$true] %s24_s26 }
  0x16   :  { %s1514_s29 = scalar_lea.hbm %s1817_s5, 4096 }
  0x17   :  { %p1515_p8 = scmp.ne.s32.totalorder %s1817_s5, %s1514_s29  ;;  %p1518_p9 = scmp.lt.u32.totalorder %s1514_s29, %s1817_s5 }
  0x19   :  { %p1520_p10 = pnand %p1518_p9, %p1515_p8 }
  0x1b   :  { %1523 = shalt.err (!%p1520_p10)
}
  0x1c   :  { %s1524_s1 = scalar_lea.vmem %s62_s24, 4096  ;;  %p1529_p12 = scmp.lt.s32.totalorder %s62_s24, %s62_s24 }
  0x1d   :  { %p1525_p11 = scmp.ne.s32.totalorder %s62_s24, %s1524_s1  ;;  %p1530_p13 = scmp.lt.s32.totalorder %s1524_s1, %s1524_s1 }
  0x1f   :  { %p1531_p0 = por %p1530_p13, %p1529_p12 }
  0x21   :  { %p1532_p1 = pnand %p1531_p0, %p1525_p11 }
  0x23   :  { %1535 = shalt.err (!%p1532_p1)
}
  0x24   :  { %s1637_s10 = smov 128   ;;  %s1638_s14 = smov 8  }
  0x25   :  { %67 = dma.hbm_to_vmem [thread:$0]  %s1817_s5, 4096, %s62_s24, [#allocation9], %s1637_s10, %s1637_s10, %s1638_s14  }
  0x26   :  { %s1536_s19 = scalar_lea.hbm %s1812_s0, 128 }
  0x27   :  { %p1537_p2 = scmp.ne.s32.totalorder %s1812_s0, %s1536_s19  ;;  %p1540_p3 = scmp.lt.u32.totalorder %s1536_s19, %s1812_s0 }
  0x29   :  { %p1542_p4 = pnand %p1540_p3, %p1537_p2 }
  0x2b   :  { %1545 = shalt.err (!%p1542_p4)
}
  0x2c   :  { %s1546_s25 = scalar_lea.vmem %s25_s26, 128  ;;  %p1551_p6 = scmp.lt.s32.totalorder %s25_s26, %s25_s26 }
  0x2d   :  { %p1547_p5 = scmp.ne.s32.totalorder %s25_s26, %s1546_s25  ;;  %p1552_p7 = scmp.lt.s32.totalorder %s1546_s25, %s1546_s25 }
  0x2f   :  { %p1553_p8 = por %p1552_p7, %p1551_p6 }
  0x31   :  { %p1554_p9 = pnand %p1553_p8, %p1547_p5 }
  0x33   :  { %1557 = shalt.err (!%p1554_p9)
}
  0x34   :  { %27 = dma.hbm_to_vmem [thread:$0]  %s1812_s0, 128, %s25_s26, [#allocation3]  }
  0x35   :  { %s1639_s27 = smov [#allocation7]   ;;  %s1640_s29 = smov [#allocation10]  }
  0x36   :  { %s47_s28 = sshll.u32 %s1639_s27, 4  ;;  %s75_s30 = sshll.u32 %s1640_s29, 4  ;;  %s48_s28 = int_to_ptr.vmem [resolvable:$true] %s47_s28  ;;  %s76_s30 = int_to_ptr.vmem [resolvable:$true] %s75_s30 }
  0x37   :  { %s1558_s13 = scalar_lea.hbm %s1815_s3, 8192 }
  0x38   :  { %p1559_p10 = scmp.ne.s32.totalorder %s1815_s3, %s1558_s13  ;;  %p1562_p11 = scmp.lt.u32.totalorder %s1558_s13, %s1815_s3 }
  0x3a   :  { %p1564_p12 = pnand %p1562_p11, %p1559_p10 }
  0x3c   :  { %1567 = shalt.err (!%p1564_p12)
}
  0x3d   :  { %s1568_s0 = scalar_lea.vmem %s48_s28, 8192  ;;  %p1573_p0 = scmp.lt.s32.totalorder %s48_s28, %s48_s28 }
  0x3e   :  { %p1569_p13 = scmp.ne.s32.totalorder %s48_s28, %s1568_s0  ;;  %p1574_p1 = scmp.lt.s32.totalorder %s1568_s0, %s1568_s0 }
  0x40   :  { %p1575_p2 = por %p1574_p1, %p1573_p0 }
  0x42   :  { %p1576_p3 = pnand %p1575_p2, %p1569_p13 }
  0x44   :  { %1579 = shalt.err (!%p1576_p3)
}
  0x45   :  { %53 = dma.hbm_to_vmem [thread:$0]  %s1815_s3, 8192, %s48_s28, [#allocation6], %s1637_s10, %s1637_s10, %s1638_s14  }
  0x46   :  { %s1580_s21 = scalar_lea.hbm %s1819_s7, 2048 }
  0x47   :  { %p1581_p4 = scmp.ne.s32.totalorder %s1819_s7, %s1580_s21  ;;  %p1584_p5 = scmp.lt.u32.totalorder %s1580_s21, %s1819_s7 }
  0x49   :  { %p1586_p6 = pnand %p1584_p5, %p1581_p4 }
  0x4b   :  { %1589 = shalt.err (!%p1586_p6)
}
  0x4c   :  { %s1590_s24 = scalar_lea.vmem %s76_s30, 2048  ;;  %p1595_p8 = scmp.lt.s32.totalorder %s76_s30, %s76_s30 }
  0x4d   :  { %p1591_p7 = scmp.ne.s32.totalorder %s76_s30, %s1590_s24  ;;  %p1596_p9 = scmp.lt.s32.totalorder %s1590_s24, %s1590_s24 }
  0x4f   :  { %p1597_p10 = por %p1596_p9, %p1595_p8 }
  0x51   :  { %p1598_p11 = pnand %p1597_p10, %p1591_p7 }
  0x53   :  { %1601 = shalt.err (!%p1598_p11)
}
  0x54   :  { %s1641_s3 = smov 64   ;;  %s1642_s10 = smov 4  }
  0x55   :  { %81 = dma.hbm_to_vmem [thread:$0]  %s1819_s7, 2048, %s76_s30, [#allocation9], %s1641_s3, %s1641_s3, %s1642_s10  }
  0x56   :  { %1624 = dma.done.wait [#allocation3], 128  }
  0x57   :  { %1625 = vsyncadd [#allocation3], 4294967168 }
  0x58   :  { %1626 = dma.done.wait [#allocation6], 8704  }
  0x59   :  { %1627 = vsyncadd [#allocation6], 4294958592 }
  0x5a   :  { %1628 = dma.done.wait [#allocation9], 6144  }
  0x5b   :  { %1629 = vsyncadd [#allocation9], 4294961152  ;;  %v1643_v0 = vmov 0   ;;  %v1326_v1 = vld [vmem:[#allocation5 + $0x4] ss:$16 sps:$4 sm:$0xff]   ;;  %v100_v3 = vld [vmem:[#allocation2] sm:$0xff]  ;;  %v108_v62 = vlaneseq }
  0x5c   :  { %184 = vmatprep.mubr.bf16.mxu1 %v1643_v0  ;;  %v1328_v2 = vld [vmem:[#allocation5] ss:$16 sps:$4 sm:$0xff]   ;;  %152 = vmatprep.subr.bf16.mxu1 %v1326_v1  ;;  %v101_v4 = vpack.c.bf16 %v100_v3, %v100_v3  ;;  %v1329_v5 = vld [vmem:[#allocation5 + $0x8] ss:$16 sps:$4 sm:$0xff]   ;;  %v1331_v6 = vld [vmem:[#allocation5 + $0xc] ss:$16 sps:$4 sm:$0xff]  }
  0x5d   :  { %153 = vmatpush1.bf16.msra.mxu1 %v1328_v2  ;;  %vm148_vm0 = vcmask 130048   ;;  %v1332_v7 = vld [vmem:[#allocation7 + $0x4] ss:$8 sps:$4 sm:$0xff]   ;;  %v1334_v8 = vld [vmem:[#allocation7] ss:$8 sps:$4 sm:$0xff]   ;;  %v1763_v1 = vshrl.u32 %v108_v62, 7 }
  0x5e   :  { %193 = vmatprep.subr.bf16.mxu1 %v1331_v6  ;;  %638 = vmatprep.subr.bf16.mxu0 %v1332_v7  ;;  %v1335_v9 = vld [vmem:[#allocation7 + $0x14] ss:$8 sps:$4 sm:$0xff]   ;;  %v1337_v10 = vld [vmem:[#allocation7 + $0x10] ss:$8 sps:$4 sm:$0xff]   ;;  %v1338_v11 = vld [vmem:[#allocation7 + $0x24] ss:$8 sps:$4 sm:$0xff]  }
  0x5f   :  { %639 = vmatpush1.bf16.msra.mxu0 %v1334_v8  ;;  %v1340_v12 = vld [vmem:[#allocation7 + $0x20] ss:$8 sps:$4 sm:$0xff]   ;;  %v1341_v13 = vld [vmem:[#allocation7 + $0x34] ss:$8 sps:$4 sm:$0xff]   ;;  %v1343_v14 = vld [vmem:[#allocation7 + $0x30] ss:$8 sps:$4 sm:$0xff]  }
  0x60   :  { %1170 = vmatmul.mubr.msk.bf16.vlgmr.msra.gmra.mrb[0].mxu1 %vm148_vm0, %v101_v4  ;;  %640 = vmatprep.subr.bf16.mxu0 %v1335_v9  ;;  %v1344_v15 = vld [vmem:[#allocation7 + $0x44] ss:$8 sps:$4 sm:$0xff]   ;;  %v1346_v16 = vld [vmem:[#allocation7 + $0x40] ss:$8 sps:$4 sm:$0xff]   ;;  %v1347_v17 = vld [vmem:[#allocation7 + $0x54] ss:$8 sps:$4 sm:$0xff]  }
  0x61   :  { %194 = vmatpush1.bf16.msra.mxu1 %v1329_v5  ;;  %225 = vmatprep.mubr.bf16.mxu1 %v1643_v0  ;;  %v1349_v18 = vld [vmem:[#allocation7 + $0x50] ss:$8 sps:$4 sm:$0xff]   ;;  %v1350_v19 = vld [vmem:[#allocation7 + $0x64] ss:$8 sps:$4 sm:$0xff]   ;;  %v1352_v20 = vld [vmem:[#allocation7 + $0x60] ss:$8 sps:$4 sm:$0xff]  }
  0x62   :  { %v1353_v21 = vld [vmem:[#allocation7 + $0x74] ss:$8 sps:$4 sm:$0xff]   ;;  %v1355_v22 = vld [vmem:[#allocation7 + $0x70] ss:$8 sps:$4 sm:$0xff]   ;;  %v1356_v23 = vld [vmem:[#allocation7 + $0x84] ss:$8 sps:$4 sm:$0xff]  }
  0x63   :  { %641 = vmatpush1.bf16.msra.mxu0 %v1337_v10  ;;  %v1358_v24 = vld [vmem:[#allocation7 + $0x80] ss:$8 sps:$4 sm:$0xff]   ;;  %v1359_v25 = vld [vmem:[#allocation7 + $0x94] ss:$8 sps:$4 sm:$0xff]   ;;  %v1361_v26 = vld [vmem:[#allocation7 + $0x90] ss:$8 sps:$4 sm:$0xff]  }
  0x64   :  { %642 = vmatprep.subr.bf16.mxu0 %v1338_v11  ;;  %v1362_v27 = vld [vmem:[#allocation7 + $0xa4] ss:$8 sps:$4 sm:$0xff]   ;;  %v1364_v28 = vld [vmem:[#allocation7 + $0xa0] ss:$8 sps:$4 sm:$0xff]   ;;  %v1365_v29 = vld [vmem:[#allocation7 + $0xb4] ss:$8 sps:$4 sm:$0xff]  }
  0x65   :  { %v1367_v30 = vld [vmem:[#allocation7 + $0xb0] ss:$8 sps:$4 sm:$0xff]   ;;  %v1368_v31 = vld [vmem:[#allocation7 + $0xc4] ss:$8 sps:$4 sm:$0xff]   ;;  %v1370_v32 = vld [vmem:[#allocation7 + $0xc0] ss:$8 sps:$4 sm:$0xff]  }
  0x66   :  { %v1371_v33 = vld [vmem:[#allocation7 + $0xd4] ss:$8 sps:$4 sm:$0xff]   ;;  %v1373_v34 = vld [vmem:[#allocation7 + $0xd0] ss:$8 sps:$4 sm:$0xff]   ;;  %v1374_v35 = vld [vmem:[#allocation7 + $0xe4] ss:$8 sps:$4 sm:$0xff]  }
  0x67   :  { %643 = vmatpush1.bf16.msra.mxu0 %v1340_v12  ;;  %v1376_v36 = vld [vmem:[#allocation7 + $0xe0] ss:$8 sps:$4 sm:$0xff]   ;;  %v1377_v37 = vld [vmem:[#allocation7 + $0xf4] ss:$8 sps:$4 sm:$0xff]   ;;  %v1379_v38 = vld [vmem:[#allocation7 + $0xf0] ss:$8 sps:$4 sm:$0xff]  }
  0x68   :  { %1171 = vmatmul.mubr.msk.bf16.vlgmr.msra.gmra.mrb[4].mxu1 %vm148_vm0, %v101_v4  ;;  %644 = vmatprep.subr.bf16.mxu0 %v1341_v13  ;;  %v1382_v39 = vld [vmem:[#allocation7 + $0x104] ss:$8 sps:$4 sm:$0xff]   ;;  %v1428_v40 = vld [vmem:[#allocation8] ss:$8 sps:$4 sm:$0xff]   ;;  %v1433_v42 = vld [vmem:[#allocation8 + $0x14] ss:$8 sps:$4 sm:$0xff]  }
  0x69   :  { %v1430_v41 = vld [vmem:[#allocation8 + $0x4] ss:$8 sps:$4 sm:$0xff]   ;;  %v1431_v43 = vld [vmem:[#allocation8 + $0x10] ss:$8 sps:$4 sm:$0xff]   ;;  %v1434_v45 = vld [vmem:[#allocation8 + $0x20] ss:$8 sps:$4 sm:$0xff]  }
  0x6a   :  { %928 = vmatprep.subr.bf16.mxu1 %v1430_v41  ;;  %v1436_v44 = vld [vmem:[#allocation8 + $0x24] ss:$8 sps:$4 sm:$0xff]   ;;  %v1439_v46 = vld [vmem:[#allocation8 + $0x34] ss:$8 sps:$4 sm:$0xff]   ;;  %v1437_v47 = vld [vmem:[#allocation8 + $0x30] ss:$8 sps:$4 sm:$0xff]  }
  0x6b   :  { %645 = vmatpush1.bf16.msra.mxu0 %v1343_v14  ;;  %929 = vmatpush1.bf16.msra.mxu1 %v1428_v40  ;;  %v1442_v48 = vld [vmem:[#allocation8 + $0x44] ss:$8 sps:$4 sm:$0xff]   ;;  %v1440_v49 = vld [vmem:[#allocation8 + $0x40] ss:$8 sps:$4 sm:$0xff]   ;;  %v1445_v50 = vld [vmem:[#allocation8 + $0x54] ss:$8 sps:$4 sm:$0xff]  }
  0x6c   :  { %646 = vmatprep.subr.bf16.mxu0 %v1344_v15  ;;  %930 = vmatprep.subr.bf16.mxu1 %v1433_v42  ;;  %v1443_v51 = vld [vmem:[#allocation8 + $0x50] ss:$8 sps:$4 sm:$0xff]   ;;  %v1448_v52 = vld [vmem:[#allocation8 + $0x64] ss:$8 sps:$4 sm:$0xff]   ;;  %v1446_v53 = vld [vmem:[#allocation8 + $0x60] ss:$8 sps:$4 sm:$0xff]  }
  0x6d   :  { %v1451_v54 = vld [vmem:[#allocation8 + $0x74] ss:$8 sps:$4 sm:$0xff]   ;;  %v1449_v55 = vld [vmem:[#allocation8 + $0x70] ss:$8 sps:$4 sm:$0xff]   ;;  %v1454_v56 = vld [vmem:[#allocation8 + $0x84] ss:$8 sps:$4 sm:$0xff]  }
  0x6e   :  { %v1452_v57 = vld [vmem:[#allocation8 + $0x80] ss:$8 sps:$4 sm:$0xff]   ;;  %v1457_v58 = vld [vmem:[#allocation8 + $0x94] ss:$8 sps:$4 sm:$0xff]   ;;  %v1455_v59 = vld [vmem:[#allocation8 + $0x90] ss:$8 sps:$4 sm:$0xff]  }
  0x6f   :  { %647 = vmatpush1.bf16.msra.mxu0 %v1346_v16  ;;  %931 = vmatpush1.bf16.msra.mxu1 %v1431_v43  ;;  %v1460_v60 = vld [vmem:[#allocation8 + $0xa4] ss:$8 sps:$4 sm:$0xff]   ;;  %v1458_v61 = vld [vmem:[#allocation8 + $0xa0] ss:$8 sps:$4 sm:$0xff]   ;;  %v1463_v63 = vld [vmem:[#allocation8 + $0xb4] ss:$8 sps:$4 sm:$0xff]  }
  0x70   :  { %648 = vmatprep.subr.bf16.mxu0 %v1347_v17  ;;  %932 = vmatprep.subr.bf16.mxu1 %v1436_v44  ;;  %v1461_v0 = vld [vmem:[#allocation8 + $0xb0] ss:$8 sps:$4 sm:$0xff]   ;;  %v1466_v2 = vld [vmem:[#allocation8 + $0xc4] ss:$8 sps:$4 sm:$0xff]   ;;  %v1464_v3 = vld [vmem:[#allocation8 + $0xc0] ss:$8 sps:$4 sm:$0xff]  }
  0x71   :  { %v1766_v4 = vsub.s32 0, %v1763_v1  ;;  %v1469_v5 = vld [vmem:[#allocation8 + $0xd4] ss:$8 sps:$4 sm:$0xff]   ;;  %v1771_v6 = vld [vmem:[%s1814_s2] sm:$0xf]  ;;  %v1774_v7 = vsub.s32 1, %v1763_v1 }
  0x72   :  { %v1467_v8 = vld [vmem:[#allocation8 + $0xd0] ss:$8 sps:$4 sm:$0xff]   ;;  %v122_v16 = vsub.s32 3, %v1763_v1  ;;  %v1400_v41 = vld [vmem:[#allocation7 + $0x164] ss:$8 sps:$4 sm:$0xff]  }
  0x73   :  { %649 = vmatpush1.bf16.msra.mxu0 %v1349_v18  ;;  %933 = vmatpush1.bf16.msra.mxu1 %v1434_v45  ;;  %v111_v9 = vrot.slane %v1771_v6, %v1766_v4  ;;  %v115_v10 = vrot.slane %v1771_v6, %v1774_v7  ;;  %v1395_v40 = vld [vmem:[#allocation7 + $0x150] ss:$8 sps:$4 sm:$0xff]   ;;  %v1398_v42 = vld [vmem:[#allocation7 + $0x160] ss:$8 sps:$4 sm:$0xff]   ;;  %v1403_v43 = vld [vmem:[#allocation7 + $0x174] ss:$8 sps:$4 sm:$0xff]  }
  0x74   :  { %650 = vmatprep.subr.bf16.mxu0 %v1350_v19  ;;  %934 = vmatprep.subr.bf16.mxu1 %v1439_v46  ;;  %v1401_v44 = vld [vmem:[#allocation7 + $0x170] ss:$8 sps:$4 sm:$0xff]   ;;  %v1406_v45 = vld [vmem:[#allocation7 + $0x184] ss:$8 sps:$4 sm:$0xff]   ;;  %v1404_v46 = vld [vmem:[#allocation7 + $0x180] ss:$8 sps:$4 sm:$0xff]  }
  0x75   :  { %v1427_v62 = vld [vmem:[#allocation7 + $0x1f4] ss:$8 sps:$4 sm:$0xff]  }
  0x77   :  { %651 = vmatpush1.bf16.msra.mxu0 %v1352_v20  ;;  %935 = vmatpush1.bf16.msra.mxu1 %v1437_v47  ;;  %v1409_v47 = vld [vmem:[#allocation7 + $0x194] ss:$8 sps:$4 sm:$0xff]  }
  0x78   :  { %652 = vmatprep.subr.bf16.mxu0 %v1353_v21  ;;  %936 = vmatprep.subr.bf16.mxu1 %v1442_v48  ;;  %v1380_v21 = vld [vmem:[#allocation7 + $0x100] ss:$8 sps:$4 sm:$0xff]   ;;  %v1407_v48 = vld [vmem:[#allocation7 + $0x190] ss:$8 sps:$4 sm:$0xff]  }
  0x7b   :  { %653 = vmatpush1.bf16.msra.mxu0 %v1355_v22  ;;  %937 = vmatpush1.bf16.msra.mxu1 %v1440_v49  ;;  %v123_v22 = vrot.slane %v1771_v6, %v122_v16  ;;  %v1412_v49 = vld [vmem:[#allocation7 + $0x1a4] ss:$8 sps:$4 sm:$0xff]  }
  0x7c   :  { %654 = vmatprep.subr.bf16.mxu0 %v1356_v23  ;;  %938 = vmatprep.subr.bf16.mxu1 %v1445_v50  ;;  %v1410_v50 = vld [vmem:[#allocation7 + $0x1a0] ss:$8 sps:$4 sm:$0xff]  }
  0x7f   :  { %655 = vmatpush1.bf16.msra.mxu0 %v1358_v24  ;;  %939 = vmatpush1.bf16.msra.mxu1 %v1443_v51  ;;  %v1385_v24 = vld [vmem:[#allocation7 + $0x114] ss:$8 sps:$4 sm:$0xff]  }
  0x80   :  { %656 = vmatprep.subr.bf16.mxu0 %v1359_v25  ;;  %940 = vmatprep.subr.bf16.mxu1 %v1448_v52  ;;  %v1415_v51 = vld [vmem:[#allocation7 + $0x1b4] ss:$8 sps:$4 sm:$0xff]   ;;  %v1413_v52 = vld [vmem:[#allocation7 + $0x1b0] ss:$8 sps:$4 sm:$0xff]  }
  0x83   :  { %657 = vmatpush1.bf16.msra.mxu0 %v1361_v26  ;;  %941 = vmatpush1.bf16.msra.mxu1 %v1446_v53  ;;  %v1418_v53 = vld [vmem:[#allocation7 + $0x1c4] ss:$8 sps:$4 sm:$0xff]  }
  0x84   :  { %658 = vmatprep.subr.bf16.mxu0 %v1362_v27  ;;  %942 = vmatprep.subr.bf16.mxu1 %v1451_v54  ;;  %v1383_v27 = vld [vmem:[#allocation7 + $0x110] ss:$8 sps:$4 sm:$0xff]   ;;  %v1416_v54 = vld [vmem:[#allocation7 + $0x1c0] ss:$8 sps:$4 sm:$0xff]  }
  0x87   :  { %659 = vmatpush1.bf16.msra.mxu0 %v1364_v28  ;;  %943 = vmatpush1.bf16.msra.mxu1 %v1449_v55  ;;  %v118_v55 = vsub.s32 2, %v1763_v1  ;;  %v1472_v1 = vld [vmem:[#allocation8 + $0xe4] ss:$8 sps:$4 sm:$0xff]  }
  0x88   :  { %660 = vmatprep.subr.bf16.mxu0 %v1365_v29  ;;  %944 = vmatprep.subr.bf16.mxu1 %v1454_v56  ;;  %v1421_v56 = vld [vmem:[#allocation7 + $0x1d4] ss:$8 sps:$4 sm:$0xff]  }
  0x8b   :  { %661 = vmatpush1.bf16.msra.mxu0 %v1367_v30  ;;  %945 = vmatpush1.bf16.msra.mxu1 %v1452_v57  ;;  %v1388_v30 = vld [vmem:[#allocation7 + $0x124] ss:$8 sps:$4 sm:$0xff]   ;;  %v1419_v57 = vld [vmem:[#allocation7 + $0x1d0] ss:$8 sps:$4 sm:$0xff]  }
  0x8c   :  { %662 = vmatprep.subr.bf16.mxu0 %v1368_v31  ;;  %946 = vmatprep.subr.bf16.mxu1 %v1457_v58  ;;  %v119_v58 = vrot.slane %v1771_v6, %v118_v55  ;;  %v1473_v6 = vld [vmem:[#allocation8 + $0xf0] ss:$8 sps:$4 sm:$0xff]  }
  0x8f   :  { %663 = vmatpush1.bf16.msra.mxu0 %v1370_v32  ;;  %947 = vmatpush1.bf16.msra.mxu1 %v1455_v59  ;;  %v1424_v59 = vld [vmem:[#allocation7 + $0x1e4] ss:$8 sps:$4 sm:$0xff]  }
  0x90   :  { %664 = vmatprep.subr.bf16.mxu0 %v1371_v33  ;;  %948 = vmatprep.subr.bf16.mxu1 %v1460_v60  ;;  %v1386_v33 = vld [vmem:[#allocation7 + $0x120] ss:$8 sps:$4 sm:$0xff]  }
  0x91   :  { %v1422_v60 = vld [vmem:[#allocation7 + $0x1e0] ss:$8 sps:$4 sm:$0xff]  }
  0x93   :  { %665 = vmatpush1.bf16.msra.mxu0 %v1373_v34  ;;  %949 = vmatpush1.bf16.msra.mxu1 %v1458_v61 }
  0x94   :  { %666 = vmatprep.subr.bf16.mxu0 %v1374_v35  ;;  %950 = vmatprep.subr.bf16.mxu1 %v1463_v63  ;;  %v1391_v35 = vld [vmem:[#allocation7 + $0x134] ss:$8 sps:$4 sm:$0xff]   ;;  %v1425_v63 = vld [vmem:[#allocation7 + $0x1f0] ss:$8 sps:$4 sm:$0xff]  }
  0x97   :  { %667 = vmatpush1.bf16.msra.mxu0 %v1376_v36  ;;  %951 = vmatpush1.bf16.msra.mxu1 %v1461_v0  ;;  %v1389_v36 = vld [vmem:[#allocation7 + $0x130] ss:$8 sps:$4 sm:$0xff]  }
  0x98   :  { %668 = vmatprep.subr.bf16.mxu0 %v1377_v37  ;;  %952 = vmatprep.subr.bf16.mxu1 %v1466_v2  ;;  %v1394_v37 = vld [vmem:[#allocation7 + $0x144] ss:$8 sps:$4 sm:$0xff]  }
  0x9b   :  { %669 = vmatpush1.bf16.msra.mxu0 %v1379_v38  ;;  %953 = vmatpush1.bf16.msra.mxu1 %v1464_v3  ;;  %v1392_v38 = vld [vmem:[#allocation7 + $0x140] ss:$8 sps:$4 sm:$0xff]  }
  0x9c   :  { %679 = vmatprep.subr.bf16.mxu0 %v1382_v39  ;;  %954 = vmatprep.subr.bf16.mxu1 %v1469_v5  ;;  %v1397_v39 = vld [vmem:[#allocation7 + $0x154] ss:$8 sps:$4 sm:$0xff]   ;;  %v1470_v3 = vld [vmem:[#allocation8 + $0xe0] ss:$8 sps:$4 sm:$0xff]  }
  0x9d   :  { %v1475_v5 = vld [vmem:[#allocation8 + $0xf4] ss:$8 sps:$4 sm:$0xff]  }
  0x9f   :  { %955 = vmatpush1.bf16.msra.mxu1 %v1467_v8  ;;  %v1476_v8 = vld [vmem:[#allocation10 + $0x40] sm:$0xff]  }
  0xa0   :  { %956 = vmatprep.subr.bf16.mxu1 %v1472_v1 }
  0xa3   :  { %957 = vmatpush1.bf16.msra.mxu1 %v1470_v3 }
  0xa4   :  { %958 = vmatprep.subr.bf16.mxu1 %v1475_v5 }
  0xa7   :  { %959 = vmatpush1.bf16.msra.mxu1 %v1473_v6 }
  0xa8   :  { %1285 = vmatprep.subr.bf16.mxu1 %v1476_v8 }
 0x133   :  { %v186_v11 = vpop.f32.mrb[0].mxu1 }
 0x134   :  { %v187_v12 = vadd.f32 %v186_v11, %v111_v9  ;;  %v188_v13 = vpop.f32.mrb[1].mxu1  ;;  %v306_v9 = vld [vmem:[%s1816_s4] sm:$0x3] }
 0x135   :  { %v189_v14 = vadd.f32 %v188_v13, %v115_v10  ;;  %v190_v15 = vpop.f32.mrb[2].mxu1  ;;  %v311_v10 = vrot.slane %v306_v9, %v1766_v4  ;;  %v315_v11 = vrot.slane %v306_v9, %v1774_v7 }
 0x136   :  { %v234_v17 = vmax.f32 %v187_v12, 0.0  ;;  %v191_v18 = vpop.f32.mrb[3].mxu1 }
 0x137   :  { %v235_v19 = vmax.f32 %v189_v14, 0.0 }
 0x138   :  { %v238_v23 = vpack.c.bf16 %v234_v17, %v234_v17 }
 0x139   :  { %v239_v20 = vpack.c.bf16 %v235_v19, %v235_v19 }
 0x13b   :  { %670 = vmatprep.mubr.bf16.mxu0 %v239_v20  ;;  %v1782_v25 = vpop.f32.mrb[4].mxu1 }
 0x13c   :  { %671 = vmatmul.mubr.bf16.vlgmr.msra.gmra.mrb[0].mxu0 %v238_v23  ;;  %v229_v26 = vpop.f32.mrb[5].mxu1  ;;  %v228_v61 = vadd.f32 %v1782_v25, %v119_v58  ;;  %v1478_v23 = vld [vmem:[#allocation10 + $0x48] sm:$0xff]   ;;  %v1480_v25 = vld [vmem:[#allocation10 + $0x50] sm:$0xff]  }
 0x13d   :  { %680 = vmatpush1.bf16.msra.mxu0 %v1380_v21  ;;  %v230_v28 = vadd.f32 %v229_v26, %v123_v22  ;;  %v231_v29 = vpop.f32.mrb[6].mxu1  ;;  %v1477_v21 = vld [vmem:[#allocation10] sm:$0xff]   ;;  %v1481_v26 = vld [vmem:[#allocation10 + $0x10] sm:$0xff]  }
 0x13e   :  { %681 = vmatprep.subr.bf16.mxu0 %v1385_v24  ;;  %v232_v31 = vpop.f32.mrb[7].mxu1  ;;  %v236_v0 = vmax.f32 %v228_v61, 0.0  ;;  %v1479_v24 = vld [vmem:[#allocation10 + $0x8] sm:$0xff]   ;;  %v1484_v29 = vld [vmem:[#allocation10 + $0x60] sm:$0xff]  }
 0x13f   :  { %v237_v32 = vmax.f32 %v230_v28, 0.0  ;;  %v1483_v28 = vld [vmem:[#allocation10 + $0x18] sm:$0xff]   ;;  %v1486_v31 = vld [vmem:[#allocation10 + $0x68] sm:$0xff]  }
 0x140   :  { %v240_v2 = vpack.c.bf16 %v236_v0, %v236_v0 }
 0x141   :  { %682 = vmatpush1.bf16.msra.mxu0 %v1383_v27  ;;  %v241_v34 = vpack.c.bf16 %v237_v32, %v237_v32  ;;  %v1482_v27 = vld [vmem:[#allocation10 + $0x58] sm:$0xff]   ;;  %v1487_v32 = vld [vmem:[#allocation10 + $0x28] sm:$0xff]  }
 0x142   :  { %683 = vmatprep.subr.bf16.mxu0 %v1388_v30  ;;  %v1485_v30 = vld [vmem:[#allocation10 + $0x20] sm:$0xff]  }
 0x143   :  { %711 = vmatprep.mubr.bf16.mxu0 %v241_v34  ;;  %v1489_v34 = vld [vmem:[#allocation10 + $0x30] sm:$0xff]  }
 0x145   :  { %684 = vmatpush1.bf16.msra.mxu0 %v1386_v33  ;;  %v1488_v33 = vld [vmem:[#allocation10 + $0x70] sm:$0xff]  }
 0x146   :  { %685 = vmatprep.subr.bf16.mxu0 %v1391_v35  ;;  %v1490_v35 = vld [vmem:[#allocation10 + $0x78] sm:$0xff]  }
 0x149   :  { %686 = vmatpush1.bf16.msra.mxu0 %v1389_v36  ;;  %v1491_v36 = vld [vmem:[#allocation10 + $0x38] sm:$0xff]  }
 0x14a   :  { %687 = vmatprep.subr.bf16.mxu0 %v1394_v37  ;;  %v756_v37 = vld [vmem:[%s1818_s6] sm:$0x3]  ;;  %s1644_s6 = smov [#allocation11]  }
 0x14b   :  { %s1155_s13 = sshll.u32 %s1644_s6, 4  ;;  %s1156_s13 = int_to_ptr.vmem [resolvable:$true] %s1155_s13 }
 0x14c   :  { %s1602_s1 = scalar_lea.vmem %s1156_s13, 128  ;;  %p1607_p13 = scmp.lt.s32.totalorder %s1156_s13, %s1156_s13 }
 0x14d   :  { %688 = vmatpush1.bf16.msra.mxu0 %v1392_v38  ;;  %v761_v38 = vrot.slane %v756_v37, %v1766_v4  ;;  %p1603_p12 = scmp.ne.s32.totalorder %s1156_s13, %s1602_s1  ;;  %p1608_p0 = scmp.lt.s32.totalorder %s1602_s1, %s1602_s1 }
 0x14e   :  { %689 = vmatprep.subr.bf16.mxu0 %v1397_v39  ;;  %v765_v39 = vrot.slane %v756_v37, %v1774_v7 }
 0x14f   :  { %p1609_p1 = por %p1608_p0, %p1607_p13 }
 0x151   :  { %690 = vmatpush1.bf16.msra.mxu0 %v1395_v40  ;;  %p1610_p2 = pnand %p1609_p1, %p1603_p12 }
 0x152   :  { %691 = vmatprep.subr.bf16.mxu0 %v1400_v41 }
 0x155   :  { %692 = vmatpush1.bf16.msra.mxu0 %v1398_v42 }
 0x156   :  { %693 = vmatprep.subr.bf16.mxu0 %v1403_v43 }
 0x159   :  { %694 = vmatpush1.bf16.msra.mxu0 %v1401_v44 }
 0x15a   :  { %695 = vmatprep.subr.bf16.mxu0 %v1406_v45 }
 0x15d   :  { %696 = vmatpush1.bf16.msra.mxu0 %v1404_v46 }
 0x15e   :  { %697 = vmatprep.subr.bf16.mxu0 %v1409_v47 }
 0x161   :  { %698 = vmatpush1.bf16.msra.mxu0 %v1407_v48 }
 0x162   :  { %699 = vmatprep.subr.bf16.mxu0 %v1412_v49 }
 0x165   :  { %700 = vmatpush1.bf16.msra.mxu0 %v1410_v50 }
 0x166   :  { %701 = vmatprep.subr.bf16.mxu0 %v1415_v51  ;;  %v1268_v51 = vld [vmem:[%s1820_s8] ss:$0 sm:$0xff] }
 0x169   :  { %702 = vmatpush1.bf16.msra.mxu0 %v1413_v52 }
 0x16a   :  { %703 = vmatprep.subr.bf16.mxu0 %v1418_v53 }
 0x16d   :  { %704 = vmatpush1.bf16.msra.mxu0 %v1416_v54 }
 0x16e   :  { %705 = vmatprep.subr.bf16.mxu0 %v1421_v56 }
 0x171   :  { %706 = vmatpush1.bf16.msra.mxu0 %v1419_v57 }
 0x172   :  { %707 = vmatprep.subr.bf16.mxu0 %v1424_v59 }
 0x175   :  { %708 = vmatpush1.bf16.msra.mxu0 %v1422_v60 }
 0x176   :  { %709 = vmatprep.subr.bf16.mxu0 %v1427_v62 }
 0x179   :  { %710 = vmatpush1.bf16.msra.mxu0 %v1425_v63 }
 0x17c   :  { %712 = vmatmul.mubr.bf16.vlgmr.msra.gmra.mrb[0].mxu0 %v240_v2 }
 0x24f   :  { %v713_v12 = vpop.f32.mrb[0].mxu0 }
 0x250   :  { %v1307_v13 = vadd.f32 %v713_v12, %v311_v10  ;;  %v715_v14 = vpop.f32.mrb[1].mxu0 }
 0x251   :  { %v1308_v15 = vadd.f32 %v715_v14, %v315_v11  ;;  %v717_v16 = vpop.f32.mrb[2].mxu0 }
 0x252   :  { %v720_v17 = vmax.f32 %v1307_v13, 0.0  ;;  %v718_v18 = vpop.f32.mrb[3].mxu0 }
 0x253   :  { %v721_v19 = vmax.f32 %v1308_v15, 0.0 }
 0x254   :  { %v722_v22 = vpack.c.bf16 %v720_v17, %v720_v17 }
 0x255   :  { %v723_v20 = vpack.c.bf16 %v721_v19, %v721_v19 }
 0x257   :  { %960 = vmatprep.mubr.bf16.mxu1 %v723_v20 }
 0x258   :  { %961 = vmatmul.mubr.bf16.vlgmr.msra.gmra.mrb[8].mxu1 %v722_v22 }
 0x259   :  { %1286 = vmatpush3.bf16.msra.mxu1 %v1477_v21 }
 0x25a   :  { %1287 = vmatprep.subr.bf16.mxu1 %v1478_v23 }
 0x25d   :  { %1288 = vmatpush3.bf16.msra.mxu1 %v1479_v24 }
 0x25e   :  { %1289 = vmatprep.subr.bf16.mxu1 %v1480_v25 }
 0x261   :  { %1290 = vmatpush3.bf16.msra.mxu1 %v1481_v26 }
 0x262   :  { %1291 = vmatprep.subr.bf16.mxu1 %v1482_v27 }
 0x265   :  { %1292 = vmatpush3.bf16.msra.mxu1 %v1483_v28 }
 0x266   :  { %1293 = vmatprep.subr.bf16.mxu1 %v1484_v29 }
 0x269   :  { %1294 = vmatpush3.bf16.msra.mxu1 %v1485_v30 }
 0x26a   :  { %1295 = vmatprep.subr.bf16.mxu1 %v1486_v31 }
 0x26d   :  { %1296 = vmatpush3.bf16.msra.mxu1 %v1487_v32 }
 0x26e   :  { %1297 = vmatprep.subr.bf16.mxu1 %v1488_v33 }
 0x271   :  { %1298 = vmatpush3.bf16.msra.mxu1 %v1489_v34 }
 0x272   :  { %1299 = vmatprep.subr.bf16.mxu1 %v1490_v35 }
 0x275   :  { %1300 = vmatpush3.bf16.msra.mxu1 %v1491_v36 }
 0x32b   :  { %v962_v40 = vpop.f32.mrb[8].mxu1 }
 0x32c   :  { %v963_v41 = vadd.f32 %v962_v40, %v761_v38  ;;  %v964_v42 = vpop.f32.mrb[9].mxu1 }
 0x32d   :  { %v965_v43 = vadd.f32 %v964_v42, %v765_v39  ;;  %v966_v44 = vpop.f32.mrb[10].mxu1 }
 0x32e   :  { %v969_v45 = vmax.f32 %v963_v41, 0.0  ;;  %v967_v46 = vpop.f32.mrb[11].mxu1 }
 0x32f   :  { %v970_v47 = vmax.f32 %v965_v43, 0.0 }
 0x330   :  { %v971_v49 = vpack.c.bf16 %v969_v45, %v969_v45 }
 0x331   :  { %v972_v48 = vpack.c.bf16 %v970_v47, %v970_v47 }
 0x333   :  { %1140 = vmatprep.mubr.bf16.mxu1 %v972_v48 }
 0x334   :  { %1141 = vmatmul.mubr.bf16.vlgmr.msra.gmra.mrb[12].mxu1 %v971_v49 }
 0x407   :  { %v1301_v50 = vpop.f32.mrb[12].mxu1 }
 0x408   :  { %v1302_v4 = vpop.f32.mrb[13].mxu1 }
 0x409   :  { %v1303_v7 = vadd.f32 %v1302_v4, %v1301_v50  ;;  %v1304_v52 = vpop.f32.mrb[14].mxu1 }
 0x40a   :  { %v1305_v53 = vpop.f32.mrb[15].mxu1 }
 0x40b   :  { %v1143_v54 = vadd.f32 %v1303_v7, %v1268_v51 }
 0x40d   :  { %1148 = vst [vmem:[#allocation11] sm:$0xff] %v1143_v54 }
 0x40e   :  { %1613 = shalt.err (!%p1610_p2)
}
 0x40f   :  { %s1614_s8 = scalar_lea.hbm %s1821_s9, 128 }
 0x410   :  { %p1615_p3 = scmp.ne.s32.totalorder %s1821_s9, %s1614_s8  ;;  %p1618_p4 = scmp.lt.u32.totalorder %s1614_s8, %s1821_s9 }
 0x412   :  { %p1620_p5 = pnand %p1618_p4, %p1615_p3 }
 0x414   :  { %1623 = shalt.err (!%p1620_p5)
}
 0x415   :  { %1158 = dma.vmem_to_hbm [thread:$0]  %s1156_s13, 128, %s1821_s9, [#allocation4]  }
 0x416   :  { %1630 = dma.done.wait [#allocation4], 128  }
 0x417   :  { %1631 = vsyncadd [#allocation4], 4294967168 }
 0x418   :  { %1162 = vsyncpa [#allocation3], 1 }
 0x419   :  { %1163 = vsyncpa [#allocation6], 1 }
 0x41a   :  { %1164 = vsyncpa [#allocation9], 1 }
 0x41b   :  { %1165 = vsyncpa [#allocation4], 1 }

</bundles_post_ra>
